<compile_context>
chip_gen: v7x
topology: tpu7x:2x2x1
jax: 0.10.0
libtpu: 0.0.40
codegen_flags: <defaults>
</compile_context>

<pallas_src>
import jax
import jax.numpy as jnp
import numpy as np
from jax.experimental import pallas as pl
from jax.experimental.pallas import tpu as pltpu

_EPS = 1e-7
_LANES = 128
_ROW_ALIGN = 32          # lcm of native sublane tiles: f32(8), bf16(16), int8(32)
_HALF_PI = float(np.pi / 2.0)


def _round_up(x, m):
    return ((x + m - 1) // m) * m


def _fast_recip(d):
    """EUP approximate reciprocal + one Newton-Raphson step (rel err ~ eps^2)."""
    r = pl.reciprocal(d, approx=True)
    return r * (2.0 - d * r)


def _atan(z):
    """Full-range arctan from guaranteed-lowerable primitives.

    |z| > 1:  atan(|z|) = pi/2 - atan(1/|z|)
    t in [0,1]: two half-angle reductions atan(t) = 4*atan(u), u = tan(theta/4),
    then a 7th-order odd Taylor series (|u| <= 0.199 -> error < 1e-6).
    """
    a = jnp.abs(z)
    big = a > 1.0
    t = jnp.where(big, _fast_recip(jnp.maximum(a, 1.0)), a)     # t in [0, 1]
    u = t * _fast_recip(1.0 + jnp.sqrt(1.0 + t * t))            # theta/2
    u = u * _fast_recip(1.0 + jnp.sqrt(1.0 + u * u))            # theta/4
    u2 = u * u
    p = u * (1.0 + u2 * (-1.0 / 3.0 + u2 * (0.2 + u2 * (-1.0 / 7.0))))
    r = 4.0 * p
    r = jnp.where(big, _HALF_PI - r, r)
    return jnp.where(z < 0.0, -r, r)


def _ciou_loss_kernel(pred_ref, gt_ref, mask_ref, out_ref):
    # pred_ref / gt_ref : (4, TR, 128) bf16|f32  — coordinate-major dense planes
    # mask_ref          : (TR, 128) int8
    # out_ref           : (TR, 128) f32|bf16
    f32 = jnp.float32
    x1p = pred_ref[0].astype(f32)
    y1p = pred_ref[1].astype(f32)
    x2p = pred_ref[2].astype(f32)
    y2p = pred_ref[3].astype(f32)
    x1g = gt_ref[0].astype(f32)
    y1g = gt_ref[1].astype(f32)
    x2g = gt_ref[2].astype(f32)
    y2g = gt_ref[3].astype(f32)
    fg = mask_ref[...] != 0

    # all differencing done in f32 after the upcast (bf16 cancellation guard)
    wp = x2p - x1p
    hp = y2p - y1p
    wg = x2g - x1g
    hg = y2g - y1g

    # intersection / union / iou (exact divide: dominant term of the loss)
    iw = jnp.maximum(jnp.minimum(x2p, x2g) - jnp.maximum(x1p, x1g), 0.0)
    ih = jnp.maximum(jnp.minimum(y2p, y2g) - jnp.maximum(y1p, y1g), 0.0)
    inter = iw * ih
    union = wp * hp + wg * hg - inter + _EPS
    iou = inter / union

    # smallest enclosing box diagonal^2
    ew = jnp.maximum(jnp.maximum(x2p, x2g) - jnp.minimum(x1p, x1g), 0.0)
    eh = jnp.maximum(jnp.maximum(y2p, y2g) - jnp.minimum(y1p, y1g), 0.0)
    c2 = ew * ew + eh * eh + _EPS

    # squared center distance
    dx = (x1p + x2p) - (x1g + x2g)
    dy = (y1p + y2p) - (y1g + y2g)
    rho2 = (dx * dx + dy * dy) * 0.25

    diou = iou - rho2 * _fast_recip(c2)

    # aspect-ratio term: atan(wp/hp) - atan(wg/hg)
    #   == atan((wp*hg - wg*hp) / (hp*hg + wp*wg))   (valid since w, h > 0)
    ang = _atan((wp * hg - wg * hp) * _fast_recip(hp * hg + wp * wg + _EPS))
    v = (4.0 / (jnp.pi ** 2)) * ang * ang
    alpha = v * _fast_recip(1.0 - iou + v + _EPS)

    loss = 1.0 - (diou - alpha * v)

    # where-masking (not multiplication) so NaN/Inf from background/degenerate
    # padded boxes never leaks into the output.
    out_ref[...] = jnp.where(fg, loss, 0.0).astype(out_ref.dtype)


def iou_loss(predicted_boxes, assigned_boxes, foreground_mask, *,
             tile_rows=1024, box_dtype=jnp.bfloat16, out_dtype=jnp.float32):
    """predicted_boxes / assigned_boxes: [..., 4] xyxy; foreground_mask: [...] bool.

    Returns the masked per-box CIoU loss with the leading shape of the inputs
    (zero at background positions).  Foreground values match
    `1 - complete_box_iou_pairwise(pred[mask], gt[mask])`.

    box_dtype=jnp.bfloat16 (default) halves box HBM traffic; use jnp.float32
    for bit-faithful f32 coordinates.
    """
    assert predicted_boxes.shape[-1] == 4
    lead = predicted_boxes.shape[:-1]
    N = int(np.prod(lead))

    # --- tile / grid sizing -------------------------------------------------
    # Rows of 128 boxes; tiles are multiples of 32 rows (int8 mask tiling).
    tile_rows = max(_ROW_ALIGN, _round_up(int(tile_rows), _ROW_ALIGN))
    r_raw = pl.cdiv(N, _LANES)
    r_aln = _round_up(r_raw, _ROW_ALIGN)
    n_steps = max(1, pl.cdiv(r_aln, tile_rows))
    if r_aln >= 2 * _ROW_ALIGN:
        n_steps = max(n_steps, 2)          # v7x: keep both TensorCores busy
    tr = _round_up(pl.cdiv(r_aln, n_steps), _ROW_ALIGN)   # tr <= tile_rows
    R = tr * n_steps
    n_pad = R * _LANES

    # --- host-side layout: cast (+pad) + transpose, one XLA fusion ----------
    def to_planes(b):
        b = b.reshape(N, 4).astype(box_dtype)
        if n_pad != N:
            b = jnp.pad(b, ((0, n_pad - N), (0, 0)))
        return b.T.reshape(4, R, _LANES)           # coordinate-major planes

    pred_cm = to_planes(predicted_boxes)
    gt_cm = to_planes(assigned_boxes)

    mask = foreground_mask.reshape(N).astype(jnp.int8)
    if n_pad != N:
        mask = jnp.pad(mask, (0, n_pad - N))
    mask2d = mask.reshape(R, _LANES)

    out = pl.pallas_call(
        _ciou_loss_kernel,
        out_shape=jax.ShapeDtypeStruct((R, _LANES), out_dtype),
        grid_spec=pltpu.PrefetchScalarGridSpec(
            num_scalar_prefetch=0,
            grid=(n_steps,),
            in_specs=[
                pl.BlockSpec((4, tr, _LANES), lambda i: (0, i, 0)),
                pl.BlockSpec((4, tr, _LANES), lambda i: (0, i, 0)),
                pl.BlockSpec((tr, _LANES), lambda i: (i, 0)),
            ],
            out_specs=pl.BlockSpec((tr, _LANES), lambda i: (i, 0)),
        ),
        compiler_params=pltpu.CompilerParams(
            dimension_semantics=("parallel",),
            # raises v5e's 16 MiB scoped default; matches v6e/v7x defaults
            vmem_limit_bytes=32 * 1024 * 1024,
            # let XLA fuse the cast/pad (and, if profitable, the transpose)
            # into the pallas_call instead of materializing an extra HBM pass
            allow_input_fusion=[True, True, True],
        ),
    )(pred_cm, gt_cm, mask2d)

    return out.reshape(n_pad)[:N].reshape(lead)


# ----------------------------------------------------------------------------
# plain-JAX reference (mirrors torchvision complete_box_iou, pairwise)
# ----------------------------------------------------------------------------
def _ciou_loss_ref(pred, gt, mask):
    pred = pred.astype(jnp.float32)
    gt = gt.astype(jnp.float32)
    x1p, y1p, x2p, y2p = [pred[..., i] for i in range(4)]
    x1g, y1g, x2g, y2g = [gt[..., i] for i in range(4)]
    wp, hp = x2p - x1p, y2p - y1p
    wg, hg = x2g - x1g, y2g - y1g
    inter = (jnp.maximum(jnp.minimum(x2p, x2g) - jnp.maximum(x1p, x1g), 0.0)
             * jnp.maximum(jnp.minimum(y2p, y2g) - jnp.maximum(y1p, y1g), 0.0))
    union = wp * hp + wg * hg - inter
    iou = inter / union
    ew = jnp.maximum(jnp.maximum(x2p, x2g) - jnp.minimum(x1p, x1g), 0.0)
    eh = jnp.maximum(jnp.maximum(y2p, y2g) - jnp.minimum(y1p, y1g), 0.0)
    c2 = ew ** 2 + eh ** 2 + _EPS
    rho2 = (((x1p + x2p) - (x1g + x2g)) ** 2 + ((y1p + y2p) - (y1g + y2g)) ** 2) / 4.0
    diou = iou - rho2 / c2
    v = (4.0 / (jnp.pi ** 2)) * (jnp.arctan(wp / hp) - jnp.arctan(wg / hg)) ** 2
    alpha = v / (1.0 - iou + v + _EPS)
    ciou = diou - alpha * v
    return jnp.where(mask, 1.0 - ciou, 0.0)


if __name__ == "__main__":
    key = jax.random.PRNGKey(0)

    def make_boxes(kc, ks, B, A):
        centers = jax.random.uniform(kc, (B, A, 2), minval=2.0, maxval=14.0)
        sizes = jax.random.uniform(ks, (B, A, 2), minval=1.0, maxval=5.0)
        return jnp.concatenate([centers - sizes / 2.0, centers + sizes / 2.0],
                               axis=-1)  # [B, A, 4] xyxy

    # case 1: non-aligned N (exercises padding), default tile size
    # case 2: small tile_rows so the grid has several steps
    cases = [(2, 1000, 1024), (2, 4096, 32)]

    for (B, A, tile_rows) in cases:
        k1, k2, k3, k4, k5, key = jax.random.split(key, 6)
        predicted_boxes = make_boxes(k1, k2, B, A)
        assigned_boxes = make_boxes(k3, k4, B, A)
        foreground_mask = jax.random.bernoulli(k5, 0.5, (B, A))

        # exact-f32 path vs f32 reference
        loss32 = jax.block_until_ready(
            iou_loss(predicted_boxes, assigned_boxes, foreground_mask,
                     tile_rows=tile_rows, box_dtype=jnp.float32))
        ref32 = _ciou_loss_ref(predicted_boxes, assigned_boxes, foreground_mask)
        np.testing.assert_allclose(np.asarray(loss32), np.asarray(ref32),
                                   rtol=5e-3, atol=5e-3)

        # default bf16-input path vs a reference fed the same bf16-quantized boxes
        loss16 = jax.block_until_ready(
            iou_loss(predicted_boxes, assigned_boxes, foreground_mask,
                     tile_rows=tile_rows))
        ref16 = _ciou_loss_ref(predicted_boxes.astype(jnp.bfloat16),
                               assigned_boxes.astype(jnp.bfloat16),
                               foreground_mask)
        np.testing.assert_allclose(np.asarray(loss16), np.asarray(ref16),
                                   rtol=5e-3, atol=5e-3)

    print("KERNEL_OK")
</pallas_src>

<mosaic_0001>
module attributes {stable_mosaic.version = 11 : i64} {
  func.func @_ciou_loss_kernel(%arg0: i32, %arg1: memref<4x32x128xf32, #tpu.memory_space<vmem>>, %arg2: memref<4x32x128xf32, #tpu.memory_space<vmem>>, %arg3: memref<32x128xi8, #tpu.memory_space<vmem>>, %arg4: memref<32x128xf32, #tpu.memory_space<vmem>>) attributes {dimension_semantics = [#tpu.dimension_semantics<parallel>], iteration_bounds = array<i64: 1>, scalar_prefetch = 0 : i64, scratch_operands = 0 : i64, tpu.core_type = #tpu.core_type<tc>, window_params = [{transform_indices = @transform_0, window_bounds = array<i64: 4, 32, 128>}, {transform_indices = @transform_1, window_bounds = array<i64: 4, 32, 128>}, {transform_indices = @transform_2, window_bounds = array<i64: 32, 128>}, {transform_indices = @transform_3, window_bounds = array<i64: 32, 128>}]} {
    %c0 = arith.constant 0 : index
    %c0_0 = arith.constant 0 : index
    %c0_1 = arith.constant 0 : index
    %0 = vector.load %arg1[%c0, %c0_0, %c0_1] : memref<4x32x128xf32, #tpu.memory_space<vmem>>, vector<1x32x128xf32>
    %1 = vector.shape_cast %0 : vector<1x32x128xf32> to vector<32x128xf32>
    %c1 = arith.constant 1 : index
    %c0_2 = arith.constant 0 : index
    %c0_3 = arith.constant 0 : index
    %2 = vector.load %arg1[%c1, %c0_2, %c0_3] : memref<4x32x128xf32, #tpu.memory_space<vmem>>, vector<1x32x128xf32>
    %3 = vector.shape_cast %2 : vector<1x32x128xf32> to vector<32x128xf32>
    %c2 = arith.constant 2 : index
    %c0_4 = arith.constant 0 : index
    %c0_5 = arith.constant 0 : index
    %4 = vector.load %arg1[%c2, %c0_4, %c0_5] : memref<4x32x128xf32, #tpu.memory_space<vmem>>, vector<1x32x128xf32>
    %5 = vector.shape_cast %4 : vector<1x32x128xf32> to vector<32x128xf32>
    %c3 = arith.constant 3 : index
    %c0_6 = arith.constant 0 : index
    %c0_7 = arith.constant 0 : index
    %6 = vector.load %arg1[%c3, %c0_6, %c0_7] : memref<4x32x128xf32, #tpu.memory_space<vmem>>, vector<1x32x128xf32>
    %7 = vector.shape_cast %6 : vector<1x32x128xf32> to vector<32x128xf32>
    %c0_8 = arith.constant 0 : index
    %c0_9 = arith.constant 0 : index
    %c0_10 = arith.constant 0 : index
    %8 = vector.load %arg2[%c0_8, %c0_9, %c0_10] : memref<4x32x128xf32, #tpu.memory_space<vmem>>, vector<1x32x128xf32>
    %9 = vector.shape_cast %8 : vector<1x32x128xf32> to vector<32x128xf32>
    %c1_11 = arith.constant 1 : index
    %c0_12 = arith.constant 0 : index
    %c0_13 = arith.constant 0 : index
    %10 = vector.load %arg2[%c1_11, %c0_12, %c0_13] : memref<4x32x128xf32, #tpu.memory_space<vmem>>, vector<1x32x128xf32>
    %11 = vector.shape_cast %10 : vector<1x32x128xf32> to vector<32x128xf32>
    %c2_14 = arith.constant 2 : index
    %c0_15 = arith.constant 0 : index
    %c0_16 = arith.constant 0 : index
    %12 = vector.load %arg2[%c2_14, %c0_15, %c0_16] : memref<4x32x128xf32, #tpu.memory_space<vmem>>, vector<1x32x128xf32>
    %13 = vector.shape_cast %12 : vector<1x32x128xf32> to vector<32x128xf32>
    %c3_17 = arith.constant 3 : index
    %c0_18 = arith.constant 0 : index
    %c0_19 = arith.constant 0 : index
    %14 = vector.load %arg2[%c3_17, %c0_18, %c0_19] : memref<4x32x128xf32, #tpu.memory_space<vmem>>, vector<1x32x128xf32>
    %15 = vector.shape_cast %14 : vector<1x32x128xf32> to vector<32x128xf32>
    %c0_20 = arith.constant 0 : index
    %c0_21 = arith.constant 0 : index
    %16 = vector.load %arg3[%c0_20, %c0_21] : memref<32x128xi8, #tpu.memory_space<vmem>>, vector<32x128xi8>
    %c0_i8 = arith.constant 0 : i8
    %17 = vector.broadcast %c0_i8 : i8 to vector<32x128xi8>
    %18 = arith.cmpi ne, %16, %17 : vector<32x128xi8>
    %19 = arith.subf %5, %1 : vector<32x128xf32>
    %20 = arith.subf %7, %3 : vector<32x128xf32>
    %21 = arith.subf %13, %9 : vector<32x128xf32>
    %22 = arith.subf %15, %11 : vector<32x128xf32>
    %23 = arith.minimumf %5, %13 : vector<32x128xf32>
    %24 = arith.maximumf %1, %9 : vector<32x128xf32>
    %25 = arith.subf %23, %24 : vector<32x128xf32>
    %cst = arith.constant 0.000000e+00 : f32
    %26 = vector.broadcast %cst : f32 to vector<32x128xf32>
    %27 = arith.maximumf %25, %26 : vector<32x128xf32>
    %28 = arith.minimumf %7, %15 : vector<32x128xf32>
    %29 = arith.maximumf %3, %11 : vector<32x128xf32>
    %30 = arith.subf %28, %29 : vector<32x128xf32>
    %cst_22 = arith.constant 0.000000e+00 : f32
    %31 = vector.broadcast %cst_22 : f32 to vector<32x128xf32>
    %32 = arith.maximumf %30, %31 : vector<32x128xf32>
    %33 = arith.mulf %27, %32 : vector<32x128xf32>
    %34 = arith.mulf %19, %20 : vector<32x128xf32>
    %35 = arith.mulf %21, %22 : vector<32x128xf32>
    %36 = arith.addf %34, %35 : vector<32x128xf32>
    %37 = arith.subf %36, %33 : vector<32x128xf32>
    %cst_23 = arith.constant 1.000000e-07 : f32
    %38 = vector.broadcast %cst_23 : f32 to vector<32x128xf32>
    %39 = arith.addf %37, %38 : vector<32x128xf32>
    %40 = arith.divf %33, %39 : vector<32x128xf32>
    %41 = arith.maximumf %5, %13 : vector<32x128xf32>
    %42 = arith.minimumf %1, %9 : vector<32x128xf32>
    %43 = arith.subf %41, %42 : vector<32x128xf32>
    %cst_24 = arith.constant 0.000000e+00 : f32
    %44 = vector.broadcast %cst_24 : f32 to vector<32x128xf32>
    %45 = arith.maximumf %43, %44 : vector<32x128xf32>
    %46 = arith.maximumf %7, %15 : vector<32x128xf32>
    %47 = arith.minimumf %3, %11 : vector<32x128xf32>
    %48 = arith.subf %46, %47 : vector<32x128xf32>
    %cst_25 = arith.constant 0.000000e+00 : f32
    %49 = vector.broadcast %cst_25 : f32 to vector<32x128xf32>
    %50 = arith.maximumf %48, %49 : vector<32x128xf32>
    %51 = arith.mulf %45, %45 : vector<32x128xf32>
    %52 = arith.mulf %50, %50 : vector<32x128xf32>
    %53 = arith.addf %51, %52 : vector<32x128xf32>
    %cst_26 = arith.constant 1.000000e-07 : f32
    %54 = vector.broadcast %cst_26 : f32 to vector<32x128xf32>
    %55 = arith.addf %53, %54 : vector<32x128xf32>
    %56 = arith.addf %1, %5 : vector<32x128xf32>
    %57 = arith.addf %9, %13 : vector<32x128xf32>
    %58 = arith.subf %56, %57 : vector<32x128xf32>
    %59 = arith.addf %3, %7 : vector<32x128xf32>
    %60 = arith.addf %11, %15 : vector<32x128xf32>
    %61 = arith.subf %59, %60 : vector<32x128xf32>
    %62 = arith.mulf %58, %58 : vector<32x128xf32>
    %63 = arith.mulf %61, %61 : vector<32x128xf32>
    %64 = arith.addf %62, %63 : vector<32x128xf32>
    %cst_27 = arith.constant 2.500000e-01 : f32
    %65 = vector.broadcast %cst_27 : f32 to vector<32x128xf32>
    %66 = arith.mulf %64, %65 : vector<32x128xf32>
    %67 = tpu.reciprocal %55 {approx = true} : vector<32x128xf32> -> vector<32x128xf32>
    %68 = arith.mulf %55, %67 : vector<32x128xf32>
    %cst_28 = arith.constant 2.000000e+00 : f32
    %69 = vector.broadcast %cst_28 : f32 to vector<32x128xf32>
    %70 = arith.subf %69, %68 : vector<32x128xf32>
    %71 = arith.mulf %67, %70 : vector<32x128xf32>
    %72 = arith.mulf %66, %71 : vector<32x128xf32>
    %73 = arith.subf %40, %72 : vector<32x128xf32>
    %74 = arith.mulf %19, %22 : vector<32x128xf32>
    %75 = arith.mulf %21, %20 : vector<32x128xf32>
    %76 = arith.subf %74, %75 : vector<32x128xf32>
    %77 = arith.mulf %20, %22 : vector<32x128xf32>
    %78 = arith.mulf %19, %21 : vector<32x128xf32>
    %79 = arith.addf %77, %78 : vector<32x128xf32>
    %cst_29 = arith.constant 1.000000e-07 : f32
    %80 = vector.broadcast %cst_29 : f32 to vector<32x128xf32>
    %81 = arith.addf %79, %80 : vector<32x128xf32>
    %82 = tpu.reciprocal %81 {approx = true} : vector<32x128xf32> -> vector<32x128xf32>
    %83 = arith.mulf %81, %82 : vector<32x128xf32>
    %cst_30 = arith.constant 2.000000e+00 : f32
    %84 = vector.broadcast %cst_30 : f32 to vector<32x128xf32>
    %85 = arith.subf %84, %83 : vector<32x128xf32>
    %86 = arith.mulf %82, %85 : vector<32x128xf32>
    %87 = arith.mulf %76, %86 : vector<32x128xf32>
    %88 = math.absf %87 : vector<32x128xf32>
    %cst_31 = arith.constant 1.000000e+00 : f32
    %89 = vector.broadcast %cst_31 : f32 to vector<32x128xf32>
    %90 = arith.cmpf ogt, %88, %89 : vector<32x128xf32>
    %cst_32 = arith.constant 1.000000e+00 : f32
    %91 = vector.broadcast %cst_32 : f32 to vector<32x128xf32>
    %92 = arith.maximumf %88, %91 : vector<32x128xf32>
    %93 = tpu.reciprocal %92 {approx = true} : vector<32x128xf32> -> vector<32x128xf32>
    %94 = arith.mulf %92, %93 : vector<32x128xf32>
    %cst_33 = arith.constant 2.000000e+00 : f32
    %95 = vector.broadcast %cst_33 : f32 to vector<32x128xf32>
    %96 = arith.subf %95, %94 : vector<32x128xf32>
    %97 = arith.mulf %93, %96 : vector<32x128xf32>
    %98 = arith.select %90, %97, %88 : vector<32x128xi1>, vector<32x128xf32>
    %99 = arith.mulf %98, %98 : vector<32x128xf32>
    %cst_34 = arith.constant 1.000000e+00 : f32
    %100 = vector.broadcast %cst_34 : f32 to vector<32x128xf32>
    %101 = arith.addf %100, %99 : vector<32x128xf32>
    %102 = math.sqrt %101 : vector<32x128xf32>
    %cst_35 = arith.constant 1.000000e+00 : f32
    %103 = vector.broadcast %cst_35 : f32 to vector<32x128xf32>
    %104 = arith.addf %103, %102 : vector<32x128xf32>
    %105 = tpu.reciprocal %104 {approx = true} : vector<32x128xf32> -> vector<32x128xf32>
    %106 = arith.mulf %104, %105 : vector<32x128xf32>
    %cst_36 = arith.constant 2.000000e+00 : f32
    %107 = vector.broadcast %cst_36 : f32 to vector<32x128xf32>
    %108 = arith.subf %107, %106 : vector<32x128xf32>
    %109 = arith.mulf %105, %108 : vector<32x128xf32>
    %110 = arith.mulf %98, %109 : vector<32x128xf32>
    %111 = arith.mulf %110, %110 : vector<32x128xf32>
    %cst_37 = arith.constant 1.000000e+00 : f32
    %112 = vector.broadcast %cst_37 : f32 to vector<32x128xf32>
    %113 = arith.addf %112, %111 : vector<32x128xf32>
    %114 = math.sqrt %113 : vector<32x128xf32>
    %cst_38 = arith.constant 1.000000e+00 : f32
    %115 = vector.broadcast %cst_38 : f32 to vector<32x128xf32>
    %116 = arith.addf %115, %114 : vector<32x128xf32>
    %117 = tpu.reciprocal %116 {approx = true} : vector<32x128xf32> -> vector<32x128xf32>
    %118 = arith.mulf %116, %117 : vector<32x128xf32>
    %cst_39 = arith.constant 2.000000e+00 : f32
    %119 = vector.broadcast %cst_39 : f32 to vector<32x128xf32>
    %120 = arith.subf %119, %118 : vector<32x128xf32>
    %121 = arith.mulf %117, %120 : vector<32x128xf32>
    %122 = arith.mulf %110, %121 : vector<32x128xf32>
    %123 = arith.mulf %122, %122 : vector<32x128xf32>
    %cst_40 = arith.constant -0.142857149 : f32
    %124 = vector.broadcast %cst_40 : f32 to vector<32x128xf32>
    %125 = arith.mulf %123, %124 : vector<32x128xf32>
    %cst_41 = arith.constant 2.000000e-01 : f32
    %126 = vector.broadcast %cst_41 : f32 to vector<32x128xf32>
    %127 = arith.addf %126, %125 : vector<32x128xf32>
    %128 = arith.mulf %123, %127 : vector<32x128xf32>
    %cst_42 = arith.constant -0.333333343 : f32
    %129 = vector.broadcast %cst_42 : f32 to vector<32x128xf32>
    %130 = arith.addf %129, %128 : vector<32x128xf32>
    %131 = arith.mulf %123, %130 : vector<32x128xf32>
    %cst_43 = arith.constant 1.000000e+00 : f32
    %132 = vector.broadcast %cst_43 : f32 to vector<32x128xf32>
    %133 = arith.addf %132, %131 : vector<32x128xf32>
    %134 = arith.mulf %122, %133 : vector<32x128xf32>
    %cst_44 = arith.constant 4.000000e+00 : f32
    %135 = vector.broadcast %cst_44 : f32 to vector<32x128xf32>
    %136 = arith.mulf %135, %134 : vector<32x128xf32>
    %cst_45 = arith.constant 1.57079637 : f32
    %137 = vector.broadcast %cst_45 : f32 to vector<32x128xf32>
    %138 = arith.subf %137, %136 : vector<32x128xf32>
    %139 = arith.select %90, %138, %136 : vector<32x128xi1>, vector<32x128xf32>
    %cst_46 = arith.constant 0.000000e+00 : f32
    %140 = vector.broadcast %cst_46 : f32 to vector<32x128xf32>
    %141 = arith.cmpf olt, %87, %140 : vector<32x128xf32>
    %cst_47 = arith.constant 0.000000e+00 : f32
    %142 = vector.broadcast %cst_47 : f32 to vector<32x128xf32>
    %143 = arith.subf %142, %139 : vector<32x128xf32>
    %144 = arith.select %141, %143, %139 : vector<32x128xi1>, vector<32x128xf32>
    %cst_48 = arith.constant 0.405284733 : f32
    %145 = vector.broadcast %cst_48 : f32 to vector<32x128xf32>
    %146 = arith.mulf %145, %144 : vector<32x128xf32>
    %147 = arith.mulf %146, %144 : vector<32x128xf32>
    %cst_49 = arith.constant 1.000000e+00 : f32
    %148 = vector.broadcast %cst_49 : f32 to vector<32x128xf32>
    %149 = arith.subf %148, %40 : vector<32x128xf32>
    %150 = arith.addf %149, %147 : vector<32x128xf32>
    %cst_50 = arith.constant 1.000000e-07 : f32
    %151 = vector.broadcast %cst_50 : f32 to vector<32x128xf32>
    %152 = arith.addf %150, %151 : vector<32x128xf32>
    %153 = tpu.reciprocal %152 {approx = true} : vector<32x128xf32> -> vector<32x128xf32>
    %154 = arith.mulf %152, %153 : vector<32x128xf32>
    %cst_51 = arith.constant 2.000000e+00 : f32
    %155 = vector.broadcast %cst_51 : f32 to vector<32x128xf32>
    %156 = arith.subf %155, %154 : vector<32x128xf32>
    %157 = arith.mulf %153, %156 : vector<32x128xf32>
    %158 = arith.mulf %147, %157 : vector<32x128xf32>
    %159 = arith.mulf %158, %147 : vector<32x128xf32>
    %160 = arith.subf %73, %159 : vector<32x128xf32>
    %cst_52 = arith.constant 1.000000e+00 : f32
    %161 = vector.broadcast %cst_52 : f32 to vector<32x128xf32>
    %162 = arith.subf %161, %160 : vector<32x128xf32>
    %cst_53 = arith.constant 0.000000e+00 : f32
    %163 = vector.broadcast %cst_53 : f32 to vector<32x128xf32>
    %164 = arith.select %18, %162, %163 : vector<32x128xi1>, vector<32x128xf32>
    %c0_54 = arith.constant 0 : index
    %c0_55 = arith.constant 0 : index
    %165 = vector.load %arg4[%c0_54, %c0_55] : memref<32x128xf32, #tpu.memory_space<vmem>>, vector<32x128xf32>
    tpu.vector_store %arg4[%c0_54, %c0_55], %164 {strides = array<i32>} : memref<32x128xf32, #tpu.memory_space<vmem>>, vector<32x128xf32>,
    return
  }
  func.func @transform_0(%arg0: i32) -> (i32, i32, i32) {
    %c0_i32 = arith.constant 0 : i32
    %c0_i32_0 = arith.constant 0 : i32
    %c0_i32_1 = arith.constant 0 : i32
    return %c0_i32, %arg0, %c0_i32_0 : i32, i32, i32
  }
  func.func @transform_1(%arg0: i32) -> (i32, i32, i32) {
    %c0_i32 = arith.constant 0 : i32
    %c0_i32_0 = arith.constant 0 : i32
    %c0_i32_1 = arith.constant 0 : i32
    return %c0_i32, %arg0, %c0_i32_0 : i32, i32, i32
  }
  func.func @transform_2(%arg0: i32) -> (i32, i32) {
    %c0_i32 = arith.constant 0 : i32
    %c0_i32_0 = arith.constant 0 : i32
    return %arg0, %c0_i32 : i32, i32
  }
  func.func @transform_3(%arg0: i32) -> (i32, i32) {
    %c0_i32 = arith.constant 0 : i32
    %c0_i32_0 = arith.constant 0 : i32
    return %arg0, %c0_i32 : i32, i32
  }
}

</mosaic_0001>

<bundles_post_ra>
// kernel: tpu_custom_call.1
= control target key start
LH: loop header
LB: loop body
LE: loop exit
PB: predicated region body
PF: predicated region fallthrough
CT: control target
= control target key end

     0   :  { %8 = vsyncpa [#allocation3], 0  ;;  %s1352_s0 = inlined_call_operand.hbm [shape: f32[4,32,128], index: 0, kind: input, shape index: {}]   ;;  %s1353_s1 = inlined_call_operand.hbm [shape: f32[4,32,128], index: 1, kind: input, shape index: {}]   ;;  %s1354_s2 = inlined_call_operand.hbm [shape: s8[32,128], index: 2, kind: input, shape index: {}]   ;;  %s1355_s3 = inlined_call_operand.hbm [shape: f32[32,128], index: 3, kind: output, shape index: {}]  }
   0x1   :  { %9 = vsyncpa [#allocation6], 0 }
   0x2   :  { %10 = vsyncpa [#allocation4], 0  ;;  %s824_s12 = smov [#allocation5]   ;;  %s825_s14 = smov [#allocation2]  }
   0x3   :  { %s28_s13 = sshll.u32 %s824_s12, 4  ;;  %s16_s15 = sshll.u32 %s825_s14, 4  ;;  %s29_s13 = int_to_ptr.vmem [resolvable:$true] %s28_s13  ;;  %s851_s15 = int_to_ptr.vmem [resolvable:$true] %s16_s15 }
   0x4   :  { %s730_s18 = scalar_lea.hbm %s1353_s1, 2048 }
   0x5   :  { %p731_p0 = scmp.ne.s32.totalorder %s1353_s1, %s730_s18  ;;  %p734_p1 = scmp.lt.u32.totalorder %s730_s18, %s1353_s1 }
   0x7   :  { %p736_p2 = pnand %p734_p1, %p731_p0 }
   0x9   :  { %739 = shalt.err (!%p736_p2)
}
   0xa   :  { %s740_s23 = scalar_lea.vmem %s29_s13, 2048  ;;  %p745_p4 = scmp.lt.s32.totalorder %s29_s13, %s29_s13 }
   0xb   :  { %p741_p3 = scmp.ne.s32.totalorder %s29_s13, %s740_s23  ;;  %p746_p5 = scmp.lt.s32.totalorder %s740_s23, %s740_s23 }
   0xd   :  { %p747_p6 = por %p746_p5, %p745_p4 }
   0xf   :  { %p748_p7 = pnand %p747_p6, %p741_p3 }
  0x11   :  { %751 = shalt.err (!%p748_p7)
}
  0x12   :  { %s826_s24 = smov 128   ;;  %s827_s25 = smov 8  }
  0x13   :  { %34 = dma.hbm_to_vmem [thread:$0]  %s1353_s1, 2048, %s29_s13, [#allocation6], %s826_s24, %s826_s24, %s827_s25  }
  0x14   :  { %s752_s30 = scalar_lea.hbm %s1352_s0, 2048 }
  0x15   :  { %p753_p8 = scmp.ne.s32.totalorder %s1352_s0, %s752_s30  ;;  %p756_p9 = scmp.lt.u32.totalorder %s752_s30, %s1352_s0 }
  0x17   :  { %p758_p10 = pnand %p756_p9, %p753_p8 }
  0x19   :  { %761 = shalt.err (!%p758_p10)
}
  0x1a   :  { %s762_s8 = scalar_lea.vmem %s851_s15, 2048  ;;  %p767_p12 = scmp.lt.s32.totalorder %s851_s15, %s851_s15 }
  0x1b   :  { %p763_p11 = scmp.ne.s32.totalorder %s851_s15, %s762_s8  ;;  %p768_p13 = scmp.lt.s32.totalorder %s762_s8, %s762_s8 }
  0x1d   :  { %p769_p0 = por %p768_p13, %p767_p12 }
  0x1f   :  { %p770_p1 = pnand %p769_p0, %p763_p11 }
  0x21   :  { %773 = shalt.err (!%p770_p1)
}
  0x22   :  { %22 = dma.hbm_to_vmem [thread:$0]  %s1352_s0, 2048, %s851_s15, [#allocation3], %s826_s24, %s826_s24, %s827_s25  }
  0x23   :  { %s828_s10 = smov [#allocation7]   ;;  %s774_s14 = scalar_lea.hbm %s1354_s2, 128 }
  0x24   :  { %s41_s11 = sshll.u32 %s828_s10, 4  ;;  %p775_p2 = scmp.ne.s32.totalorder %s1354_s2, %s774_s14  ;;  %s42_s11 = int_to_ptr.vmem [resolvable:$true] %s41_s11 }
  0x25   :  { %p778_p3 = scmp.lt.u32.totalorder %s774_s14, %s1354_s2 }
  0x27   :  { %p780_p4 = pnand %p778_p3, %p775_p2 }
  0x29   :  { %783 = shalt.err (!%p780_p4)
}
  0x2a   :  { %s784_s20 = scalar_lea.vmem %s42_s11, 128  ;;  %p789_p6 = scmp.lt.s32.totalorder %s42_s11, %s42_s11 }
  0x2b   :  { %p785_p5 = scmp.ne.s32.totalorder %s42_s11, %s784_s20  ;;  %p790_p7 = scmp.lt.s32.totalorder %s784_s20, %s784_s20 }
  0x2d   :  { %p791_p8 = por %p790_p7, %p789_p6 }
  0x2f   :  { %p792_p9 = pnand %p791_p8, %p785_p5 }
  0x31   :  { %795 = shalt.err (!%p792_p9)
}
  0x32   :  { %44 = dma.hbm_to_vmem [thread:$0]  %s1354_s2, 128, %s42_s11, [#allocation6]  }
  0x33   :  { %818 = dma.done.wait [#allocation3], 2048  }
  0x34   :  { %819 = vsyncadd [#allocation3], 4294965248 }
  0x35   :  { %820 = dma.done.wait [#allocation6], 2176  }
  0x36   :  { %821 = vsyncadd [#allocation6], 4294965120  ;;  %v900_v0 = vld [vmem:[#allocation2] sm:$0xff]  ;;  %v902_v1 = vld [vmem:[#allocation2 + $0x8] sm:$0xff]  ;;  %s830_s2 = smov [#allocation8]  }
  0x37   :  { %v904_v2 = vld [vmem:[#allocation2 + $0x10] sm:$0xff]  ;;  %v906_v3 = vld [vmem:[#allocation2 + $0x18] sm:$0xff]  ;;  %v908_v4 = vld [vmem:[#allocation2 + $0x20] sm:$0xff]  ;;  %s638_s21 = sshll.u32 %s830_s2, 4  ;;  %s639_s21 = int_to_ptr.vmem [resolvable:$true] %s638_s21 }
  0x38   :  { %1390 = vst [vmem:[#allocation12_spill] sm:$0xff] %v908_v4  ;;  %v910_v5 = vld [vmem:[#allocation2 + $0x28] sm:$0xff]  ;;  %v912_v6 = vld [vmem:[#allocation2 + $0x30] sm:$0xff]  ;;  %v914_v7 = vld [vmem:[#allocation2 + $0x40] sm:$0xff]  ;;  %s796_s22 = scalar_lea.vmem %s639_s21, 512  ;;  %p801_p11 = scmp.lt.s32.totalorder %s639_s21, %s639_s21 }
  0x39   :  { %1391 = vst [vmem:[#allocation13_spill] sm:$0xff] %v910_v5  ;;  %1392 = vst [vmem:[#allocation14_spill] sm:$0xff] %v912_v6  ;;  %v916_v8 = vld [vmem:[#allocation2 + $0x48] sm:$0xff]  ;;  %v918_v9 = vld [vmem:[#allocation2 + $0x50] sm:$0xff]  ;;  %v924_v11 = vadd.f32 %v914_v7, %v900_v0  ;;  %v936_v16 = vsub.f32 %v914_v7, %v900_v0  ;;  %p797_p10 = scmp.ne.s32.totalorder %s639_s21, %s796_s22  ;;  %p802_p12 = scmp.lt.s32.totalorder %s796_s22, %s796_s22 }
  0x3a   :  { %v920_v10 = vld [vmem:[#allocation2 + $0x58] sm:$0xff]  ;;  %v928_v13 = vld [vmem:[#allocation2 + $0x60] sm:$0xff]  ;;  %v930_v14 = vld [vmem:[#allocation2 + $0x68] sm:$0xff]  ;;  %v940_v17 = vsub.f32 %v916_v8, %v902_v1  ;;  %v944_v18 = vsub.f32 %v918_v9, %v904_v2  ;;  %v948_v19 = vadd.f32 %v916_v8, %v902_v1  ;;  %v970_v26 = vadd.f32 %v918_v9, %v904_v2 }
  0x3b   :  { %1393 = vst [vmem:[#allocation15_spill] sm:$0xff] %v924_v11  ;;  %v926_v12 = vld [vmem:[#allocation2 + $0x38] sm:$0xff]  ;;  %v932_v15 = vld [vmem:[#allocation2 + $0x70] sm:$0xff]  ;;  %1396 = vst [vmem:[#allocation18_spill] sm:$0xff] %v936_v16  ;;  %v958_v23 = vsub.f32 %v920_v10, %v906_v3  ;;  %v962_v24 = vsub.f32 %v928_v13, %v908_v4  ;;  %v966_v25 = vsub.f32 %v930_v14, %v910_v5  ;;  %p803_p13 = por %p802_p12, %p801_p11 }
  0x3c   :  { %1394 = vst [vmem:[#allocation16_spill] sm:$0xff] %v926_v12  ;;  %1395 = vst [vmem:[#allocation17_spill] sm:$0xff] %v932_v15  ;;  %v950_v20 = vld [vmem:[#allocation2 + $0x78] sm:$0xff]  ;;  %v952_v21 = vld [vmem:[#allocation5] sm:$0xff]  ;;  %v980_v30 = vsub.f32 %v932_v15, %v912_v6 }
  0x3d   :  { %1397 = vst [vmem:[#allocation19_spill] sm:$0xff] %v940_v17  ;;  %1398 = vst [vmem:[#allocation20_spill] sm:$0xff] %v948_v19  ;;  %v954_v22 = vld [vmem:[#allocation5 + $0x8] sm:$0xff]  ;;  %v972_v27 = vld [vmem:[#allocation5 + $0x10] sm:$0xff]  ;;  %v116_v31 = vmax.f32 %v900_v0, %v952_v21  ;;  %v148_v40 = vmul.f32 %v962_v24, %v936_v16  ;;  %v149_v47 = vmul.f32 %v966_v25, %v940_v17  ;;  %p804_p0 = pnand %p803_p13, %p797_p10 }
  0x3e   :  { %1399 = vst [vmem:[#allocation21_spill] sm:$0xff] %v958_v23  ;;  %1400 = vst [vmem:[#allocation22_spill] sm:$0xff] %v962_v24  ;;  %v974_v28 = vld [vmem:[#allocation5 + $0x18] sm:$0xff]  ;;  %v976_v29 = vld [vmem:[#allocation5 + $0x20] sm:$0xff]  ;;  %v117_v32 = vmax.f32 %v902_v1, %v954_v22  ;;  %v118_v37 = vmax.f32 %v904_v2, %v972_v27  ;;  %v1024_v51 = vsub.f32 %v950_v20, %v926_v12 }
  0x3f   :  { %1401 = vst [vmem:[#allocation23_spill] sm:$0xff] %v966_v25  ;;  %1402 = vst [vmem:[#allocation24_spill] sm:$0xff] %v970_v26  ;;  %v988_v34 = vld [vmem:[#allocation5 + $0x28] sm:$0xff]  ;;  %v990_v35 = vld [vmem:[#allocation5 + $0x30] sm:$0xff]  ;;  %v119_v38 = vmax.f32 %v906_v3, %v974_v28  ;;  %v132_v39 = vmax.f32 %v908_v4, %v976_v29 }
  0x40   :  { %1403 = vst [vmem:[#allocation25_spill] sm:$0xff] %v976_v29  ;;  %1404 = vst [vmem:[#allocation26_spill] sm:$0xff] %v988_v34  ;;  %v992_v36 = vld [vmem:[#allocation5 + $0x38] sm:$0xff]  ;;  %v1002_v41 = vld [vmem:[#allocation5 + $0x40] sm:$0xff]  ;;  %v133_v44 = vmax.f32 %v910_v5, %v988_v34  ;;  %v134_v45 = vmax.f32 %v912_v6, %v990_v35 }
  0x41   :  { %1405 = vst [vmem:[#allocation27_spill] sm:$0xff] %v990_v35  ;;  %1406 = vst [vmem:[#allocation28_spill] sm:$0xff] %v992_v36  ;;  %v1004_v42 = vld [vmem:[#allocation5 + $0x48] sm:$0xff]  ;;  %v1006_v43 = vld [vmem:[#allocation5 + $0x50] sm:$0xff]  ;;  %v135_v46 = vmax.f32 %v926_v12, %v992_v36  ;;  %v1028_v52 = vsub.f32 %v1002_v41, %v952_v21  ;;  %v112_v54 = vmin.f32 %v914_v7, %v1002_v41 }
  0x42   :  { %v1016_v48 = vld [vmem:[#allocation5 + $0x58] sm:$0xff]  ;;  %v1018_v49 = vld [vmem:[#allocation5 + $0x60] sm:$0xff]  ;;  %v1020_v50 = vld [vmem:[#allocation5 + $0x68] sm:$0xff]  ;;  %v1032_v53 = vsub.f32 %v1004_v42, %v954_v22  ;;  %v1042_v57 = vsub.f32 %v1006_v43, %v972_v27  ;;  %v113_v60 = vmin.f32 %v916_v8, %v1004_v42  ;;  %v114_v33 = vmin.f32 %v918_v9, %v1006_v43 }
  0x43   :  { %v1036_v55 = vld [vmem:[#allocation5 + $0x70] sm:$0xff]  ;;  %v1038_v56 = vld [vmem:[#allocation5 + $0x78] sm:$0xff]  ;;  %v1046_v58 = vsub.f32 %v1016_v48, %v974_v28  ;;  %v1050_v59 = vsub.f32 %v1018_v49, %v976_v29  ;;  %v1056_v61 = vsub.f32 %v1020_v50, %v988_v34  ;;  %v115_v17 = vmin.f32 %v920_v10, %v1016_v48 }
  0x44   :  { %1407 = vst [vmem:[#allocation29_spill] sm:$0xff] %v1036_v55  ;;  %1408 = vst [vmem:[#allocation30_spill] sm:$0xff] %v1042_v57  ;;  %v1060_v62 = vsub.f32 %v1036_v55, %v990_v35  ;;  %v1064_v63 = vsub.f32 %v1038_v56, %v992_v36  ;;  %v120_v16 = vsub.f32 %v112_v54, %v116_v31 }
  0x45   :  { %1409 = vst [vmem:[#allocation31_spill] sm:$0xff] %v1046_v58  ;;  %v121_v25 = vsub.f32 %v113_v60, %v117_v32  ;;  %v128_v24 = vmin.f32 %v928_v13, %v1018_v49  ;;  %v122_v26 = vsub.f32 %v114_v33, %v118_v37  ;;  %v129_v19 = vmin.f32 %v930_v14, %v1020_v50 }
  0x46   :  { %v130_v11 = vmin.f32 %v932_v15, %v1036_v55  ;;  %v131_v12 = vmin.f32 %v950_v20, %v1038_v56  ;;  %v123_v36 = vsub.f32 %v115_v17, %v119_v38  ;;  %v124_v6 = vmax.f32 %v120_v16, 0.0 }
  0x47   :  { %v125_v35 = vmax.f32 %v121_v25, 0.0  ;;  %v136_v5 = vsub.f32 %v128_v24, %v132_v39  ;;  %v126_v34 = vmax.f32 %v122_v26, 0.0  ;;  %v137_v31 = vsub.f32 %v129_v19, %v133_v44 }
  0x48   :  { %v138_v32 = vsub.f32 %v130_v11, %v134_v45  ;;  %v139_v54 = vsub.f32 %v131_v12, %v135_v46  ;;  %v127_v60 = vmax.f32 %v123_v36, 0.0  ;;  %v150_v33 = vmul.f32 %v980_v30, %v944_v18 }
  0x49   :  { %v140_v4 = vmax.f32 %v136_v5, 0.0  ;;  %v151_v37 = vmul.f32 %v1024_v51, %v958_v23  ;;  %v141_v29 = vmax.f32 %v137_v31, 0.0  ;;  %v152_v16 = vmul.f32 %v1050_v59, %v1028_v52 }
  0x4a   :  { %v142_v15 = vmax.f32 %v138_v32, 0.0  ;;  %v143_v55 = vmax.f32 %v139_v54, 0.0  ;;  %v153_v11 = vmul.f32 %v1056_v61, %v1032_v53  ;;  %v154_v5 = vmul.f32 %v1060_v62, %v1042_v57 }
  0x4b   :  { %v1084_v17 = vmul.f32 %v140_v4, %v124_v6  ;;  %v155_v12 = vmul.f32 %v1064_v63, %v1046_v58  ;;  %v1092_v19 = vmul.f32 %v141_v29, %v125_v35  ;;  %v156_v26 = vadd.f32 %v152_v16, %v148_v40 }
  0x4c   :  { %v1094_v24 = vmul.f32 %v142_v15, %v126_v34  ;;  %v1096_v25 = vmul.f32 %v143_v55, %v127_v60  ;;  %v157_v36 = vadd.f32 %v153_v11, %v149_v47  ;;  %v158_v38 = vadd.f32 %v154_v5, %v150_v33  ;;  %v1411_v5 = vld [vmem:[#allocation29_spill] sm:$0xff] }
  0x4d   :  { %v159_v4 = vadd.f32 %v155_v12, %v151_v37  ;;  %v176_v6 = vmax.f32 %v914_v7, %v1002_v41  ;;  %v160_v39 = vsub.f32 %v156_v26, %v1084_v17  ;;  %v177_v44 = vmax.f32 %v916_v8, %v1004_v42  ;;  %v1412_v12 = vld [vmem:[#allocation17_spill] sm:$0xff] }
  0x4e   :  { %v178_v29 = vmax.f32 %v918_v9, %v1006_v43  ;;  %v179_v15 = vmax.f32 %v920_v10, %v1016_v48  ;;  %v161_v34 = vsub.f32 %v157_v36, %v1092_v19  ;;  %v162_v35 = vsub.f32 %v158_v38, %v1094_v24  ;;  %v1413_v38 = vld [vmem:[#allocation25_spill] sm:$0xff] }
  0x4f   :  { %v163_v40 = vsub.f32 %v159_v4, %v1096_v25  ;;  %v181_v7 = vmin.f32 %v902_v1, %v954_v22  ;;  %v164_v45 = vadd.f32 1e-07, %v160_v39  ;;  %v182_v46 = vmin.f32 %v904_v2, %v972_v27  ;;  %v1414_v4 = vld [vmem:[#allocation12_spill] sm:$0xff]  ;;  %v1415_v39 = vld [vmem:[#allocation26_spill] sm:$0xff] }
  0x50   :  { %v183_v8 = vmin.f32 %v906_v3, %v974_v28  ;;  %v1410_v9 = vmin.f32 %v900_v0, %v952_v21  ;;  %v165_v55 = vadd.f32 1e-07, %v161_v34  ;;  %v166_v31 = vadd.f32 1e-07, %v162_v35  ;;  %v1418_v34 = vld [vmem:[#allocation14_spill] sm:$0xff] }
  0x51   :  { %v167_v32 = vadd.f32 1e-07, %v163_v40  ;;  %v185_v54 = vsub.f32 %v177_v44, %v181_v7  ;;  %658 = vrcp.f32 %v164_v45  ;;  %v186_v60 = vsub.f32 %v178_v29, %v182_v46  ;;  %v1416_v44 = vld [vmem:[#allocation13_spill] sm:$0xff]  ;;  %v1419_v40 = vld [vmem:[#allocation28_spill] sm:$0xff] }
  0x52   :  { %v184_v47 = vsub.f32 %v176_v6, %v1410_v9  ;;  %v187_v33 = vsub.f32 %v179_v15, %v183_v8  ;;  %660 = vrcp.f32 %v165_v55  ;;  %v192_v2 = vmax.f32 %v928_v13, %v1018_v49  ;;  %v1417_v15 = vld [vmem:[#allocation27_spill] sm:$0xff]  ;;  %v1420_v7 = vld [vmem:[#allocation16_spill] sm:$0xff] }
  0x53   :  { %v189_v1 = vmax.f32 %v185_v54, 0.0  ;;  %v193_v16 = vmax.f32 %v930_v14, %v1020_v50  ;;  %662 = vrcp.f32 %v166_v31  ;;  %v190_v11 = vmax.f32 %v186_v60, 0.0 }
  0x54   :  { %v188_v37 = vmax.f32 %v184_v47, 0.0  ;;  %v191_v0 = vmax.f32 %v187_v33, 0.0  ;;  %v194_v26 = vmax.f32 %v1412_v12, %v1411_v5  ;;  %664 = vrcp.f32 %v167_v32 }
  0x55   :  { %v195_v36 = vmax.f32 %v950_v20, %v1038_v56  ;;  %v196_v6 = vmin.f32 %v1414_v4, %v1413_v38  ;;  %v197_v29 = vmin.f32 %v1416_v44, %v1415_v39  ;;  %v198_v35 = vmin.f32 %v1418_v34, %v1417_v15 }
  0x56   :  { %v199_v45 = vmin.f32 %v1420_v7, %v1419_v40  ;;  %v208_v46 = vmul.f32 %v188_v37, %v188_v37  ;;  %v209_v8 = vmul.f32 %v189_v1, %v189_v1  ;;  %v210_v55 = vmul.f32 %v190_v11, %v190_v11  ;;  %v1421_v11 = vld [vmem:[#allocation15_spill] sm:$0xff] }
  0x57   :  { %v200_v9 = vsub.f32 %v192_v2, %v196_v6  ;;  %v201_v47 = vsub.f32 %v193_v16, %v197_v29  ;;  %v211_v31 = vmul.f32 %v191_v0, %v191_v0  ;;  %v202_v32 = vsub.f32 %v194_v26, %v198_v35 }
  0x58   :  { %v203_v54 = vsub.f32 %v195_v36, %v199_v45  ;;  %v227_v60 = vadd.f32 %v920_v10, %v906_v3  ;;  %v228_v33 = vadd.f32 %v1002_v41, %v952_v21  ;;  %v229_v57 = vadd.f32 %v1004_v42, %v954_v22  ;;  %v1422_v10 = vld [vmem:[#allocation20_spill] sm:$0xff] }
  0x59   :  { %v204_v58 = vmax.f32 %v200_v9, 0.0  ;;  %v205_v23 = vmax.f32 %v201_v47, 0.0  ;;  %v230_v37 = vadd.f32 %v1006_v43, %v972_v27  ;;  %v206_v1 = vmax.f32 %v202_v32, 0.0  ;;  %v1423_v21 = vld [vmem:[#allocation24_spill] sm:$0xff] }
  0x5a   :  { %v207_v2 = vmax.f32 %v203_v54, 0.0  ;;  %v231_v16 = vadd.f32 %v1016_v48, %v974_v28  ;;  %v232_v0 = vsub.f32 %v1421_v11, %v228_v33  ;;  %v233_v36 = vsub.f32 %v1422_v10, %v229_v57  ;;  %v1427_v10 = vld [vmem:[#allocation19_spill] sm:$0xff] }
  0x5b   :  { %v212_v26 = vmul.f32 %v204_v58, %v204_v58  ;;  %v213_v3 = vmul.f32 %v205_v23, %v205_v23  ;;  %v234_v41 = vsub.f32 %v1423_v21, %v230_v37  ;;  %v659_v6 = vpop.eup %658  ;;  %v214_v29 = vmul.f32 %v206_v1, %v206_v1  ;;  %v1428_v21 = vld [vmem:[#allocation30_spill] sm:$0xff] }
  0x5c   :  { %v215_v35 = vmul.f32 %v207_v2, %v207_v2  ;;  %v235_v22 = vsub.f32 %v227_v60, %v231_v16  ;;  %v236_v27 = vadd.f32 %v928_v13, %v1414_v4  ;;  %v661_v42 = vpop.eup %660  ;;  %v1151_v43 = vmul.f32 %v659_v6, %v1084_v17  ;;  %v1425_v2 = vld [vmem:[#allocation23_spill] sm:$0xff]  ;;  %v1429_v6 = vld [vmem:[#allocation21_spill] sm:$0xff] }
  0x5d   :  { %v216_v28 = vadd.f32 %v212_v26, %v208_v46  ;;  %v217_v48 = vadd.f32 %v213_v3, %v209_v8  ;;  %v237_v23 = vadd.f32 %v930_v14, %v1416_v44  ;;  %v663_v58 = vpop.eup %662  ;;  %v1156_v57 = vmul.f32 %v661_v42, %v1092_v19  ;;  %v1426_v26 = vld [vmem:[#allocation18_spill] sm:$0xff] }
  0x5e   :  { %v218_v45 = vadd.f32 %v214_v29, %v210_v55  ;;  %v219_v9 = vadd.f32 %v215_v35, %v211_v31  ;;  %v238_v47 = vadd.f32 %v1412_v12, %v1418_v34  ;;  %v665_v32 = vpop.eup %664  ;;  %v1161_v13 = vmul.f32 %v663_v58, %v1094_v24  ;;  %v1430_v29 = vld [vmem:[#allocation31_spill] sm:$0xff] }
  0x5f   :  { %v220_v17 = vadd.f32 1e-07, %v216_v28  ;;  %v221_v4 = vadd.f32 1e-07, %v217_v48  ;;  %v239_v46 = vadd.f32 %v950_v20, %v1420_v7  ;;  %v1166_v14 = vmul.f32 %v665_v32, %v1096_v25 }
  0x60   :  { %v222_v44 = vadd.f32 1e-07, %v218_v45  ;;  %v223_v19 = vadd.f32 1e-07, %v219_v9  ;;  %v240_v8 = vadd.f32 %v1018_v49, %v1413_v38  ;;  %v241_v12 = vadd.f32 %v1020_v50, %v1415_v39 }
  0x61   :  { %v242_v24 = vadd.f32 %v1411_v5, %v1417_v15  ;;  %v243_v34 = vadd.f32 %v1038_v56, %v1419_v40  ;;  %v248_v55 = vmul.f32 %v232_v0, %v232_v0  ;;  %v249_v20 = vmul.f32 %v233_v36, %v233_v36  ;;  %v1424_v40 = vld [vmem:[#allocation22_spill] sm:$0xff] }
  0x62   :  { %v244_v31 = vsub.f32 %v236_v27, %v240_v8  ;;  %v250_v7 = vmul.f32 %v234_v41, %v234_v41  ;;  %v251_v25 = vmul.f32 %v235_v22, %v235_v22  ;;  %v245_v54 = vsub.f32 %v237_v23, %v241_v12 }
  0x63   :  { %v246_v60 = vsub.f32 %v238_v47, %v242_v24  ;;  %v247_v33 = vsub.f32 %v239_v46, %v243_v34  ;;  %666 = vrcp.f32 %v220_v17  ;;  %v300_v1 = vmul.f32 %v1050_v59, %v1424_v40 }
  0x64   :  { %v252_v37 = vmul.f32 %v244_v31, %v244_v31  ;;  %668 = vrcp.f32 %v221_v4  ;;  %v253_v49 = vmul.f32 %v245_v54, %v245_v54  ;;  %v301_v16 = vmul.f32 %v1056_v61, %v1425_v2 }
  0x65   :  { %v254_v38 = vmul.f32 %v246_v60, %v246_v60  ;;  %v255_v50 = vmul.f32 %v247_v33, %v247_v33  ;;  %670 = vrcp.f32 %v222_v44  ;;  %v302_v11 = vmul.f32 %v1060_v62, %v980_v30 }
  0x66   :  { %v256_v39 = vadd.f32 %v252_v37, %v248_v55  ;;  %672 = vrcp.f32 %v223_v19  ;;  %v257_v5 = vadd.f32 %v253_v49, %v249_v20  ;;  %v303_v0 = vmul.f32 %v1064_v63, %v1024_v51 }
  0x67   :  { %v258_v15 = vadd.f32 %v254_v38, %v250_v7  ;;  %v259_v56 = vadd.f32 %v255_v50, %v251_v25  ;;  %v304_v3 = vmul.f32 %v1028_v52, %v1426_v26  ;;  %v305_v36 = vmul.f32 %v1032_v53, %v1427_v10 }
  0x68   :  { %v306_v41 = vmul.f32 %v1428_v21, %v944_v18  ;;  %v307_v35 = vmul.f32 %v1430_v29, %v1429_v6  ;;  %v260_v9 = vmul.f32 0.25, %v256_v39  ;;  %v261_v47 = vmul.f32 0.25, %v257_v5 }
  0x69   :  { %v308_v27 = vadd.f32 %v304_v3, %v300_v1  ;;  %v309_v48 = vadd.f32 %v305_v36, %v301_v16  ;;  %v262_v25 = vmul.f32 0.25, %v258_v15  ;;  %v263_v60 = vmul.f32 0.25, %v259_v56 }
  0x6a   :  { %v310_v23 = vadd.f32 %v306_v41, %v302_v11  ;;  %v311_v58 = vadd.f32 %v307_v35, %v303_v0  ;;  %v288_v1 = vmul.f32 %v1050_v59, %v1426_v26  ;;  %v292_v16 = vmul.f32 %v1028_v52, %v1424_v40 }
  0x6b   :  { %v312_v46 = vadd.f32 1e-07, %v308_v27  ;;  %v313_v34 = vadd.f32 1e-07, %v309_v48  ;;  %v289_v0 = vmul.f32 %v1056_v61, %v1427_v10  ;;  %v293_v3 = vmul.f32 %v1032_v53, %v1425_v2 }
  0x6c   :  { %v314_v55 = vadd.f32 1e-07, %v310_v23  ;;  %v315_v7 = vadd.f32 1e-07, %v311_v58  ;;  %v290_v41 = vmul.f32 %v1060_v62, %v944_v18  ;;  %v294_v35 = vmul.f32 %v1428_v21, %v980_v30 }
  0x6d   :  { %v667_v22 = vpop.eup %666  ;;  %674 = vrcp.f32 %v312_v46  ;;  %v291_v59 = vmul.f32 %v1064_v63, %v1429_v6  ;;  %v295_v52 = vmul.f32 %v1430_v29, %v1024_v51  ;;  %v296_v26 = vsub.f32 %v288_v1, %v292_v16 }
  0x6e   :  { %v669_v42 = vpop.eup %668  ;;  %v268_v28 = vmul.f32 %v667_v22, %v220_v17  ;;  %676 = vrcp.f32 %v313_v34  ;;  %v297_v2 = vsub.f32 %v289_v0, %v293_v3  ;;  %v298_v18 = vsub.f32 %v290_v41, %v294_v35 }
  0x6f   :  { %v671_v45 = vpop.eup %670  ;;  %v269_v32 = vmul.f32 %v669_v42, %v221_v4  ;;  %678 = vrcp.f32 %v314_v55  ;;  %v299_v30 = vsub.f32 %v291_v59, %v295_v52 }
  0x70   :  { %v673_v8 = vpop.eup %672  ;;  %v270_v12 = vmul.f32 %v671_v45, %v222_v44  ;;  %v272_v24 = vsub.f32 2.0, %v268_v28  ;;  %680 = vrcp.f32 %v315_v7 }
  0x71   :  { %v271_v31 = vmul.f32 %v673_v8, %v223_v19  ;;  %v273_v20 = vsub.f32 2.0, %v269_v32 }
  0x72   :  { %v274_v54 = vsub.f32 2.0, %v270_v12  ;;  %v276_v17 = vmul.f32 %v667_v22, %v272_v24 }
  0x73   :  { %v275_v33 = vsub.f32 2.0, %v271_v31  ;;  %v277_v37 = vmul.f32 %v669_v42, %v273_v20 }
  0x74   :  { %v278_v49 = vmul.f32 %v671_v45, %v274_v54  ;;  %v1192_v4 = vmul.f32 %v276_v17, %v260_v9 }
  0x75   :  { %v279_v44 = vmul.f32 %v673_v8, %v275_v33  ;;  %v1194_v38 = vmul.f32 %v277_v37, %v261_v47 }
  0x76   :  { %v1196_v50 = vmul.f32 %v278_v49, %v262_v25  ;;  %v284_v19 = vsub.f32 %v1151_v43, %v1192_v4 }
  0x77   :  { %v1200_v39 = vmul.f32 %v279_v44, %v263_v60  ;;  %v285_v5 = vsub.f32 %v1156_v57, %v1194_v38  ;;  %v675_v11 = vpop.eup %674 }
  0x78   :  { %v286_v15 = vsub.f32 %v1161_v13, %v1196_v50  ;;  %v677_v36 = vpop.eup %676  ;;  %v320_v22 = vmul.f32 %v675_v11, %v312_v46 }
  0x79   :  { %v287_v56 = vsub.f32 %v1166_v14, %v1200_v39  ;;  %v679_v27 = vpop.eup %678  ;;  %v321_v40 = vmul.f32 %v677_v36, %v313_v34 }
  0x7a   :  { %v681_v61 = vpop.eup %680  ;;  %v322_v10 = vmul.f32 %v679_v27, %v314_v55  ;;  %v324_v53 = vsub.f32 2.0, %v320_v22 }
  0x7b   :  { %v323_v42 = vmul.f32 %v681_v61, %v315_v7  ;;  %v325_v28 = vsub.f32 2.0, %v321_v40 }
  0x7c   :  { %v326_v62 = vsub.f32 2.0, %v322_v10  ;;  %v328_v48 = vmul.f32 %v675_v11, %v324_v53 }
  0x7d   :  { %v327_v21 = vsub.f32 2.0, %v323_v42  ;;  %v329_v23 = vmul.f32 %v677_v36, %v325_v28 }
  0x7e   :  { %v330_v58 = vmul.f32 %v679_v27, %v326_v62  ;;  %v1224_v45 = vmul.f32 %v328_v48, %v296_v26 }
  0x7f   :  { %v331_v63 = vmul.f32 %v681_v61, %v327_v21  ;;  %v1226_v6 = vmul.f32 %v329_v23, %v297_v2 }
  0x80   :  { %v1228_v51 = vmul.f32 %v330_v58, %v298_v18  ;;  %v1231_v29 = vand.u32 2147483647, %v1224_v45 }
  0x81   :  { %v1233_v9 = vmul.f32 %v331_v63, %v299_v30  ;;  %v1236_v47 = vand.u32 2147483647, %v1226_v6 }
  0x82   :  { %v1239_v32 = vand.u32 2147483647, %v1228_v51  ;;  %v344_v46 = vmax.f32 %v1231_v29, 1.0  ;;  %vm340_vm0 = vcmp.gt.f32.partialorder %v1231_v29, 1.0 }
  0x83   :  { %v1243_v8 = vand.u32 2147483647, %v1233_v9  ;;  %v345_v12 = vmax.f32 %v1236_v47, 1.0  ;;  %vm341_vm1 = vcmp.gt.f32.partialorder %v1236_v47, 1.0 }
  0x84   :  { %v346_v24 = vmax.f32 %v1239_v32, 1.0  ;;  %682 = vrcp.f32 %v344_v46  ;;  %vm342_vm2 = vcmp.gt.f32.partialorder %v1239_v32, 1.0 }
  0x85   :  { %v347_v34 = vmax.f32 %v1243_v8, 1.0  ;;  %684 = vrcp.f32 %v345_v12  ;;  %vm343_vm3 = vcmp.gt.f32.partialorder %v1243_v8, 1.0 }
  0x86   :  { %686 = vrcp.f32 %v346_v24 }
  0x87   :  { %688 = vrcp.f32 %v347_v34 }
  0x8e   :  { %v683_v55 = vpop.eup %682 }
  0x8f   :  { %v685_v31 = vpop.eup %684  ;;  %v352_v20 = vmul.f32 %v683_v55, %v344_v46 }
  0x90   :  { %v687_v7 = vpop.eup %686  ;;  %v353_v25 = vmul.f32 %v685_v31, %v345_v12 }
  0x91   :  { %v689_v54 = vpop.eup %688  ;;  %v354_v17 = vmul.f32 %v687_v7, %v346_v24  ;;  %v356_v60 = vsub.f32 2.0, %v352_v20 }
  0x92   :  { %v355_v33 = vmul.f32 %v689_v54, %v347_v34  ;;  %v357_v37 = vsub.f32 2.0, %v353_v25 }
  0x93   :  { %v358_v49 = vsub.f32 2.0, %v354_v17  ;;  %v360_v44 = vmul.f32 %v683_v55, %v356_v60 }
  0x94   :  { %v359_v1 = vsub.f32 2.0, %v355_v33  ;;  %v361_v16 = vmul.f32 %v685_v31, %v357_v37 }
  0x95   :  { %v362_v11 = vmul.f32 %v687_v7, %v358_v49  ;;  %v1255_v0 = vsel %vm340_vm0, %v360_v44, %v1231_v29 }
  0x96   :  { %v363_v3 = vmul.f32 %v689_v54, %v359_v1  ;;  %v1260_v36 = vsel %vm341_vm1, %v361_v16, %v1236_v47  ;;  %v368_v41 = vmul.f32 %v1255_v0, %v1255_v0 }
  0x97   :  { %v1267_v35 = vsel %vm342_vm2, %v362_v11, %v1239_v32  ;;  %v369_v22 = vmul.f32 %v1260_v36, %v1260_v36  ;;  %v553_v32 = vsub.f32 1.0, %v1156_v57 }
  0x98   :  { %v1274_v27 = vsel %vm343_vm3, %v363_v3, %v1243_v8  ;;  %v370_v59 = vmul.f32 %v1267_v35, %v1267_v35  ;;  %v372_v52 = vadd.f32 1.0, %v368_v41 }
  0x99   :  { %v371_v40 = vmul.f32 %v1274_v27, %v1274_v27  ;;  %v373_v61 = vadd.f32 1.0, %v369_v22 }
  0x9a   :  { %v374_v26 = vadd.f32 1.0, %v370_v59  ;;  %690 = vrsqrt.f32 %v372_v52  ;;  %vm378_vm4 = vcmp.eq.f32.partialorder %v372_v52, inf  ;;  %vm380_vm5 = vcmp.eq.f32.partialorder %v372_v52, 0.0 }
  0x9b   :  { %v375_v10 = vadd.f32 1.0, %v371_v40  ;;  %692 = vrsqrt.f32 %v373_v61  ;;  %v381_v2 = vand.u32 2147483648, %v372_v52  ;;  %vm385_vm6 = vcmp.eq.f32.partialorder %v373_v61, inf }
  0x9c   :  { %694 = vrsqrt.f32 %v374_v26  ;;  %vm387_vm7 = vcmp.eq.f32.partialorder %v373_v61, 0.0  ;;  %v388_v18 = vand.u32 2147483648, %v373_v61  ;;  %vm392_vm8 = vcmp.eq.f32.partialorder %v374_v26, inf }
  0x9d   :  { %696 = vrsqrt.f32 %v375_v10  ;;  %vm394_vm9 = vcmp.eq.f32.partialorder %v374_v26, 0.0  ;;  %v395_v30 = vand.u32 2147483648, %v374_v26  ;;  %vm399_vm10 = vcmp.eq.f32.partialorder %v375_v10, inf }
  0x9e   :  { %v402_v63 = vand.u32 2147483648, %v375_v10  ;;  %vm401_vm11 = vcmp.eq.f32.partialorder %v375_v10, 0.0 }
  0xa4   :  { %v691_v53 = vpop.eup %690 }
  0xa5   :  { %v693_v42 = vpop.eup %692  ;;  %v377_v28 = vmul.f32 %v691_v53, %v372_v52 }
  0xa6   :  { %v695_v62 = vpop.eup %694  ;;  %v384_v48 = vmul.f32 %v693_v42, %v373_v61 }
  0xa7   :  { %v697_v21 = vpop.eup %696  ;;  %v379_v23 = vsel %vm378_vm4, %v372_v52, %v377_v28  ;;  %v391_v58 = vmul.f32 %v695_v62, %v374_v26 }
  0xa8   :  { %v382_v46 = vsel %vm380_vm5, %v381_v2, %v379_v23  ;;  %v386_v12 = vsel %vm385_vm6, %v373_v61, %v384_v48  ;;  %v398_v24 = vmul.f32 %v697_v21, %v375_v10 }
  0xa9   :  { %v389_v34 = vsel %vm387_vm7, %v388_v18, %v386_v12  ;;  %v393_v55 = vsel %vm392_vm8, %v374_v26, %v391_v58  ;;  %v404_v31 = vadd.f32 1.0, %v382_v46  ;;  %vm532_vm8 = vcmp.lt.f32.partialorder %v1224_v45, 0.0 }
  0xaa   :  { %v396_v20 = vsel %vm394_vm9, %v395_v30, %v393_v55  ;;  %v400_v7 = vsel %vm399_vm10, %v375_v10, %v398_v24  ;;  %v405_v25 = vadd.f32 1.0, %v389_v34  ;;  %vm533_vm9 = vcmp.lt.f32.partialorder %v1226_v6, 0.0 }
  0xab   :  { %v403_v54 = vsel %vm401_vm11, %v402_v63, %v400_v7  ;;  %v406_v17 = vadd.f32 1.0, %v396_v20  ;;  %698 = vrcp.f32 %v404_v31  ;;  %vm534_vm11 = vcmp.lt.f32.partialorder %v1228_v51, 0.0 }
  0xac   :  { %v407_v60 = vadd.f32 1.0, %v403_v54  ;;  %700 = vrcp.f32 %v405_v25  ;;  %v552_v6 = vsub.f32 1.0, %v1151_v43 }
  0xad   :  { %702 = vrcp.f32 %v406_v17 }
  0xae   :  { %704 = vrcp.f32 %v407_v60 }
  0xb5   :  { %v699_v33 = vpop.eup %698 }
  0xb6   :  { %v701_v37 = vpop.eup %700  ;;  %v412_v49 = vmul.f32 %v699_v33, %v404_v31 }
  0xb7   :  { %v703_v44 = vpop.eup %702  ;;  %v413_v1 = vmul.f32 %v701_v37, %v405_v25 }
  0xb8   :  { %v705_v16 = vpop.eup %704  ;;  %v414_v11 = vmul.f32 %v703_v44, %v406_v17  ;;  %v416_v3 = vsub.f32 2.0, %v412_v49 }
  0xb9   :  { %v415_v41 = vmul.f32 %v705_v16, %v407_v60  ;;  %v417_v22 = vsub.f32 2.0, %v413_v1 }
  0xba   :  { %v418_v59 = vsub.f32 2.0, %v414_v11  ;;  %v420_v52 = vmul.f32 %v699_v33, %v416_v3 }
  0xbb   :  { %v419_v40 = vsub.f32 2.0, %v415_v41  ;;  %v421_v61 = vmul.f32 %v701_v37, %v417_v22 }
  0xbc   :  { %v422_v26 = vmul.f32 %v703_v44, %v418_v59  ;;  %v1283_v10 = vmul.f32 %v420_v52, %v1255_v0 }
  0xbd   :  { %v423_v53 = vmul.f32 %v705_v16, %v419_v40  ;;  %v1286_v2 = vmul.f32 %v421_v61, %v1260_v36 }
  0xbe   :  { %v1289_v42 = vmul.f32 %v422_v26, %v1267_v35  ;;  %v428_v28 = vmul.f32 %v1283_v10, %v1283_v10 }
  0xbf   :  { %v1294_v18 = vmul.f32 %v423_v53, %v1274_v27  ;;  %v429_v62 = vmul.f32 %v1286_v2, %v1286_v2 }
  0xc0   :  { %v430_v0 = vmul.f32 %v1289_v42, %v1289_v42  ;;  %v432_v48 = vadd.f32 1.0, %v428_v28 }
  0xc1   :  { %v431_v36 = vmul.f32 %v1294_v18, %v1294_v18  ;;  %v433_v30 = vadd.f32 1.0, %v429_v62 }
  0xc2   :  { %v434_v21 = vadd.f32 1.0, %v430_v0  ;;  %706 = vrsqrt.f32 %v432_v48  ;;  %vm438_vm12 = vcmp.eq.f32.partialorder %v432_v48, inf  ;;  %vm440_vm13 = vcmp.eq.f32.partialorder %v432_v48, 0.0 }
  0xc3   :  { %v435_v35 = vadd.f32 1.0, %v431_v36  ;;  %708 = vrsqrt.f32 %v433_v30  ;;  %v441_v27 = vand.u32 2147483648, %v432_v48  ;;  %vm445_vm14 = vcmp.eq.f32.partialorder %v433_v30, inf }
  0xc4   :  { %710 = vrsqrt.f32 %v434_v21  ;;  %vm447_vm15 = vcmp.eq.f32.partialorder %v433_v30, 0.0  ;;  %v448_v46 = vand.u32 2147483648, %v433_v30  ;;  %vm452_vm4 = vcmp.eq.f32.partialorder %v434_v21, inf }
  0xc5   :  { %712 = vrsqrt.f32 %v435_v35  ;;  %vm454_vm5 = vcmp.eq.f32.partialorder %v434_v21, 0.0  ;;  %v455_v34 = vand.u32 2147483648, %v434_v21  ;;  %vm459_vm6 = vcmp.eq.f32.partialorder %v435_v35, inf }
  0xc6   :  { %v462_v7 = vand.u32 2147483648, %v435_v35  ;;  %vm461_vm7 = vcmp.eq.f32.partialorder %v435_v35, 0.0 }
  0xcc   :  { %v707_v23 = vpop.eup %706 }
  0xcd   :  { %v709_v58 = vpop.eup %708  ;;  %v437_v63 = vmul.f32 %v707_v23, %v432_v48 }
  0xce   :  { %v711_v12 = vpop.eup %710  ;;  %v444_v24 = vmul.f32 %v709_v58, %v433_v30 }
  0xcf   :  { %v713_v55 = vpop.eup %712  ;;  %v439_v31 = vsel %vm438_vm12, %v432_v48, %v437_v63  ;;  %v451_v20 = vmul.f32 %v711_v12, %v434_v21 }
  0xd0   :  { %v442_v25 = vsel %vm440_vm13, %v441_v27, %v439_v31  ;;  %v446_v54 = vsel %vm445_vm14, %v433_v30, %v444_v24  ;;  %v458_v17 = vmul.f32 %v713_v55, %v435_v35 }
  0xd1   :  { %v449_v60 = vsel %vm447_vm15, %v448_v46, %v446_v54  ;;  %v453_v33 = vsel %vm452_vm4, %v434_v21, %v451_v20  ;;  %v464_v37 = vadd.f32 1.0, %v442_v25 }
  0xd2   :  { %v456_v49 = vsel %vm454_vm5, %v455_v34, %v453_v33  ;;  %v460_v44 = vsel %vm459_vm6, %v435_v35, %v458_v17  ;;  %v465_v1 = vadd.f32 1.0, %v449_v60 }
  0xd3   :  { %v463_v16 = vsel %vm461_vm7, %v462_v7, %v460_v44  ;;  %v466_v11 = vadd.f32 1.0, %v456_v49  ;;  %714 = vrcp.f32 %v464_v37 }
  0xd4   :  { %v467_v3 = vadd.f32 1.0, %v463_v16  ;;  %716 = vrcp.f32 %v465_v1 }
  0xd5   :  { %718 = vrcp.f32 %v466_v11 }
  0xd6   :  { %720 = vrcp.f32 %v467_v3 }
  0xdd   :  { %v715_v41 = vpop.eup %714 }
  0xde   :  { %v717_v22 = vpop.eup %716  ;;  %v472_v59 = vmul.f32 %v715_v41, %v464_v37 }
  0xdf   :  { %v719_v52 = vpop.eup %718  ;;  %v473_v40 = vmul.f32 %v717_v22, %v465_v1 }
  0xe0   :  { %v721_v61 = vpop.eup %720  ;;  %v474_v26 = vmul.f32 %v719_v52, %v466_v11  ;;  %v476_v53 = vsub.f32 2.0, %v472_v59 }
  0xe1   :  { %v475_v28 = vmul.f32 %v721_v61, %v467_v3  ;;  %v477_v62 = vsub.f32 2.0, %v473_v40 }
  0xe2   :  { %v478_v0 = vsub.f32 2.0, %v474_v26  ;;  %v480_v48 = vmul.f32 %v715_v41, %v476_v53 }
  0xe3   :  { %v479_v36 = vsub.f32 2.0, %v475_v28  ;;  %v481_v30 = vmul.f32 %v717_v22, %v477_v62 }
  0xe4   :  { %v482_v21 = vmul.f32 %v719_v52, %v478_v0  ;;  %v484_v35 = vmul.f32 %v480_v48, %v1283_v10 }
  0xe5   :  { %v483_v23 = vmul.f32 %v721_v61, %v479_v36  ;;  %v485_v27 = vmul.f32 %v481_v30, %v1286_v2  ;;  %v94_v36 = vld [vmem:[#allocation7] sm:$0xff] }
  0xe6   :  { %v486_v58 = vmul.f32 %v482_v21, %v1289_v42  ;;  %v488_v63 = vmul.f32 %v484_v35, %v484_v35  ;;  %vm95_vm10 = vnez %v94_v36 }
  0xe7   :  { %v487_v46 = vmul.f32 %v483_v23, %v1294_v18  ;;  %v489_v12 = vmul.f32 %v485_v27, %v485_v27 }
  0xe8   :  { %v490_v24 = vmul.f32 %v486_v58, %v486_v58  ;;  %v492_v34 = vmul.f32 -0.14285715, %v488_v63 }
  0xe9   :  { %v491_v55 = vmul.f32 %v487_v46, %v487_v46  ;;  %v493_v31 = vmul.f32 -0.14285715, %v489_v12 }
  0xea   :  { %v494_v20 = vmul.f32 -0.14285715, %v490_v24  ;;  %v496_v7 = vadd.f32 0.2, %v492_v34 }
  0xeb   :  { %v495_v25 = vmul.f32 -0.14285715, %v491_v55  ;;  %v497_v54 = vadd.f32 0.2, %v493_v31 }
  0xec   :  { %v498_v17 = vadd.f32 0.2, %v494_v20  ;;  %v500_v60 = vmul.f32 %v496_v7, %v488_v63  ;;  %v554_v7 = vsub.f32 1.0, %v1161_v13 }
  0xed   :  { %v499_v10 = vadd.f32 0.2, %v495_v25  ;;  %v501_v33 = vmul.f32 %v497_v54, %v489_v12 }
  0xee   :  { %v502_v37 = vmul.f32 %v498_v17, %v490_v24  ;;  %v504_v2 = vadd.f32 -0.33333334, %v500_v60 }
  0xef   :  { %v503_v49 = vmul.f32 %v499_v10, %v491_v55  ;;  %v505_v42 = vadd.f32 -0.33333334, %v501_v33 }
  0xf0   :  { %v506_v44 = vadd.f32 -0.33333334, %v502_v37  ;;  %v508_v1 = vmul.f32 %v504_v2, %v488_v63  ;;  %v829_v2 = vmov 0  }
  0xf1   :  { %v507_v18 = vadd.f32 -0.33333334, %v503_v49  ;;  %v509_v16 = vmul.f32 %v505_v42, %v489_v12  ;;  %v596_v49 = vsel %vm95_vm10, 16843009, %v829_v2 }
  0xf2   :  { %v510_v11 = vmul.f32 %v506_v44, %v490_v24  ;;  %v512_v3 = vadd.f32 1.0, %v508_v1 }
  0xf3   :  { %v511_v41 = vmul.f32 %v507_v18, %v491_v55  ;;  %v513_v22 = vadd.f32 1.0, %v509_v16 }
  0xf4   :  { %v514_v59 = vadd.f32 1.0, %v510_v11  ;;  %v516_v52 = vmul.f32 %v512_v3, %v484_v35  ;;  %v597_v11 = vunpack.c.0.s8 %v596_v49 }
  0xf5   :  { %v515_v40 = vadd.f32 1.0, %v511_v41  ;;  %v517_v61 = vmul.f32 %v513_v22, %v485_v27  ;;  %v598_v41 = vunpack.c.1.s8 %v596_v49  ;;  %v599_v22 = vunpack.c.2.s8 %v596_v49 }
  0xf6   :  { %v518_v26 = vmul.f32 %v514_v59, %v486_v58  ;;  %v520_v53 = vmul.f32 4.0, %v516_v52  ;;  %v600_v59 = vunpack.c.3.s8 %v596_v49  ;;  %v601_v52 = vpack.c.b16 %v597_v11, %v597_v11 }
  0xf7   :  { %v519_v28 = vmul.f32 %v515_v40, %v487_v46  ;;  %v521_v62 = vmul.f32 4.0, %v517_v61  ;;  %v603_v40 = vpack.c.b16 %v598_v41, %v598_v41  ;;  %v605_v61 = vpack.c.b16 %v599_v22, %v599_v22 }
  0xf8   :  { %v522_v0 = vmul.f32 4.0, %v518_v26  ;;  %v524_v48 = vsub.f32 1.5707964, %v520_v53  ;;  %v607_v26 = vpack.c.b16 %v600_v59, %v600_v59 }
  0xf9   :  { %v523_v30 = vmul.f32 4.0, %v519_v28  ;;  %v525_v21 = vsub.f32 1.5707964, %v521_v62  ;;  %v604_v28 = vpack.c.b8 %v603_v40, %v603_v40 }
  0xfa   :  { %v526_v23 = vsub.f32 1.5707964, %v522_v0  ;;  %v528_v63 = vsel %vm340_vm0, %v524_v48, %v520_v53  ;;  %vm535_vm0 = vcmp.lt.f32.partialorder %v1233_v9, 0.0  ;;  %v555_v9 = vsub.f32 1.0, %v1166_v14 }
  0xfb   :  { %v527_v12 = vsub.f32 1.5707964, %v523_v30  ;;  %v529_v35 = vsel %vm341_vm1, %v525_v21, %v521_v62  ;;  %v536_v27 = vsub.f32 0.0, %v528_v63  ;;  %v602_v53 = vpack.c.b8 %v601_v52, %v601_v52 }
  0xfc   :  { %v530_v58 = vsel %vm342_vm2, %v526_v23, %v522_v0  ;;  %v537_v46 = vsub.f32 0.0, %v529_v35  ;;  %v606_v0 = vpack.c.b8 %v605_v61, %v605_v61  ;;  %vm610_vm2 = vnez %v604_v28 }
  0xfd   :  { %v531_v29 = vsel %vm343_vm3, %v527_v12, %v523_v30  ;;  %v538_v45 = vsub.f32 0.0, %v530_v58  ;;  %v540_v24 = vsel %vm532_vm8, %v536_v27, %v528_v63  ;;  %v608_v30 = vpack.c.b8 %v607_v26, %v607_v26 }
  0xfe   :  { %v539_v34 = vsub.f32 0.0, %v531_v29  ;;  %v541_v47 = vsel %vm533_vm9, %v537_v46, %v529_v35  ;;  %v544_v55 = vmul.f32 0.40528473, %v540_v24  ;;  %vm609_vm1 = vnez %v602_v53 }
  0xff   :  { %v542_v31 = vsel %vm534_vm11, %v538_v45, %v530_v58  ;;  %v545_v20 = vmul.f32 0.40528473, %v541_v47  ;;  %vm611_vm3 = vnez %v606_v0  ;;  %vm612_vm12 = vnez %v608_v30 }
 0x100   :  { %v543_v51 = vsel %vm535_vm0, %v539_v34, %v531_v29  ;;  %v546_v25 = vmul.f32 0.40528473, %v542_v31  ;;  %v548_v54 = vmul.f32 %v544_v55, %v540_v24  ;;  %v613_v45 = vsel %vm609_vm1, 16843009, %v829_v2 }
 0x101   :  { %v547_v8 = vmul.f32 0.40528473, %v543_v51  ;;  %v549_v17 = vmul.f32 %v545_v20, %v541_v47  ;;  %v614_v47 = vsel %vm610_vm2, 16843009, %v829_v2 }
 0x102   :  { %v550_v60 = vmul.f32 %v546_v25, %v542_v31  ;;  %v556_v10 = vadd.f32 %v552_v6, %v548_v54  ;;  %v615_v31 = vsel %vm611_vm3, 16843009, %v829_v2 }
 0x103   :  { %v551_v33 = vmul.f32 %v547_v8, %v543_v51  ;;  %v557_v37 = vadd.f32 %v553_v32, %v549_v17  ;;  %v617_v51 = vunpack.c.0.s8 %v613_v45  ;;  %v619_v49 = vunpack.c.0.s8 %v615_v31 }
 0x104   :  { %v558_v42 = vadd.f32 %v554_v7, %v550_v60  ;;  %v560_v44 = vadd.f32 1e-07, %v556_v10  ;;  %v616_v7 = vsel %vm612_vm12, 16843009, %v829_v2 }
 0x105   :  { %v559_v1 = vadd.f32 %v555_v9, %v551_v33  ;;  %v561_v18 = vadd.f32 1e-07, %v557_v37  ;;  %v618_v9 = vunpack.c.0.s8 %v614_v47  ;;  %vm621_vm13 = vcmp.ne.s32.totalorder %v617_v51, 0 }
 0x106   :  { %v562_v16 = vadd.f32 1e-07, %v558_v42  ;;  %722 = vrcp.f32 %v560_v44  ;;  %vm623_vm15 = vcmp.ne.s32.totalorder %v619_v49, 0 }
 0x107   :  { %v563_v3 = vadd.f32 1e-07, %v559_v1  ;;  %724 = vrcp.f32 %v561_v18  ;;  %v620_v1 = vunpack.c.0.s8 %v616_v7  ;;  %vm622_vm14 = vcmp.ne.s32.totalorder %v618_v9, 0 }
 0x108   :  { %726 = vrcp.f32 %v562_v16 }
 0x109   :  { %728 = vrcp.f32 %v563_v3  ;;  %vm624_vm4 = vcmp.ne.s32.totalorder %v620_v1, 0 }
 0x110   :  { %v723_v62 = vpop.eup %722 }
 0x111   :  { %v725_v48 = vpop.eup %724  ;;  %v568_v36 = vmul.f32 %v723_v62, %v560_v44 }
 0x112   :  { %v727_v21 = vpop.eup %726  ;;  %v569_v23 = vmul.f32 %v725_v48, %v561_v18 }
 0x113   :  { %v729_v63 = vpop.eup %728  ;;  %v570_v12 = vmul.f32 %v727_v21, %v562_v16  ;;  %v572_v35 = vsub.f32 2.0, %v568_v36 }
 0x114   :  { %v571_v27 = vmul.f32 %v729_v63, %v563_v3  ;;  %v573_v58 = vsub.f32 2.0, %v569_v23 }
 0x115   :  { %v574_v46 = vsub.f32 2.0, %v570_v12  ;;  %v576_v29 = vmul.f32 %v723_v62, %v572_v35 }
 0x116   :  { %v575_v24 = vsub.f32 2.0, %v571_v27  ;;  %v577_v34 = vmul.f32 %v725_v48, %v573_v58 }
 0x117   :  { %v578_v55 = vmul.f32 %v727_v21, %v574_v46  ;;  %v580_v6 = vmul.f32 %v576_v29, %v548_v54 }
 0x118   :  { %v579_v20 = vmul.f32 %v729_v63, %v575_v24  ;;  %v581_v32 = vmul.f32 %v577_v34, %v549_v17 }
 0x119   :  { %v582_v25 = vmul.f32 %v578_v55, %v550_v60  ;;  %v584_v8 = vmul.f32 %v580_v6, %v548_v54 }
 0x11a   :  { %v583_v10 = vmul.f32 %v579_v20, %v551_v33  ;;  %v585_v37 = vmul.f32 %v581_v32, %v549_v17 }
 0x11b   :  { %v586_v42 = vmul.f32 %v582_v25, %v550_v60  ;;  %v588_v44 = vsub.f32 %v284_v19, %v584_v8 }
 0x11c   :  { %v587_v18 = vmul.f32 %v583_v10, %v551_v33  ;;  %v589_v16 = vsub.f32 %v285_v5, %v585_v37 }
 0x11d   :  { %v590_v54 = vsub.f32 %v286_v15, %v586_v42  ;;  %v592_v2 = vsub.f32 1.0, %v588_v44 }
 0x11e   :  { %v591_v17 = vsub.f32 %v287_v56, %v587_v18  ;;  %v593_v60 = vsub.f32 1.0, %v589_v16 }
 0x11f   :  { %v594_v43 = vsub.f32 1.0, %v590_v54  ;;  %v625_v4 = vsel %vm621_vm13, %v592_v2, 0.0 }
 0x120   :  { %v595_v57 = vsub.f32 1.0, %v591_v17  ;;  %v626_v38 = vsel %vm622_vm14, %v593_v60, 0.0  ;;  %629 = vst [vmem:[#allocation8] sm:$0xff] %v625_v4 }
 0x121   :  { %v627_v19 = vsel %vm623_vm15, %v594_v43, 0.0  ;;  %630 = vst [vmem:[#allocation8 + $0x8] sm:$0xff] %v626_v38 }
 0x122   :  { %v628_v13 = vsel %vm624_vm4, %v595_v57, 0.0  ;;  %631 = vst [vmem:[#allocation8 + $0x10] sm:$0xff] %v627_v19 }
 0x123   :  { %632 = vst [vmem:[#allocation8 + $0x18] sm:$0xff] %v628_v13 }
 0x124   :  { %807 = shalt.err (!%p804_p0)
}
 0x125   :  { %s808_s27 = scalar_lea.hbm %s1355_s3, 512 }
 0x126   :  { %p809_p1 = scmp.ne.s32.totalorder %s1355_s3, %s808_s27  ;;  %p812_p2 = scmp.lt.u32.totalorder %s808_s27, %s1355_s3 }
 0x128   :  { %p814_p3 = pnand %p812_p2, %p809_p1 }
 0x12a   :  { %817 = shalt.err (!%p814_p3)
}
 0x12b   :  { %644 = dma.vmem_to_hbm [thread:$0]  %s639_s21, 512, %s1355_s3, [#allocation4], %s826_s24, %s826_s24, %s827_s25  }
 0x12c   :  { %822 = dma.done.wait [#allocation4], 512  }
 0x12d   :  { %823 = vsyncadd [#allocation4], 4294966784 }
 0x12e   :  { %648 = vsyncpa [#allocation3], 1 }
 0x12f   :  { %649 = vsyncpa [#allocation6], 1 }
 0x130   :  { %650 = vsyncpa [#allocation4], 1 }

</bundles_post_ra>
